<compile_context>
chip_gen: v6e
topology: v6e:2x2x1
jax: 0.10.0
libtpu: 0.0.40
codegen_flags: <defaults>
</compile_context>

<pallas_src>
import functools

import jax
import jax.numpy as jnp
from jax.experimental import pallas as pl
from jax.experimental.pallas import tpu as pltpu


def _round_up(n, m):
    return ((n + m - 1) // m) * m


def policy_mu_kernel(x_ref, w1_ref, b1_ref, w2_ref, b2_ref, mu_ref):
    """Transposed layout (batch on lanes):
         h_t  = relu(W1 @ x_t + b1)      (Hp, TB)   VPU (K = S tiny)
         mu_t = W2 @ h_t + b2            (A_pad, TB) MXU, bf16 in / f32 acc
    """
    x_t = x_ref[...]                     # (S, TB)  f32
    w1 = w1_ref[...]                     # (Hp, S)  f32
    S = x_t.shape[0]

    # fc1 + relu: contraction depth K = S is tiny -> skip the MXU, do S
    # broadcast-FMAs on the VPU (broadcasts go through the idle XLU).
    h = b1_ref[...] + w1[:, 0:1] * x_t[0:1, :]           # (Hp, TB)
    for k in range(1, S):                                # static unroll, S small
        h = h + w1[:, k:k + 1] * x_t[k:k + 1, :]
    h = jnp.maximum(h, 0.0)

    # fc2_mean: (A_pad, Hp) @ (Hp, TB) on the MXU, bf16 inputs, f32 accumulation.
    mu = jnp.dot(w2_ref[...], h.astype(jnp.bfloat16),
                 preferred_element_type=jnp.float32)
    mu_ref[...] = (mu + b2_ref[...]).astype(mu_ref.dtype)  # lane-dense (A_pad, TB) store


def prepare_params(w1, b1, w2, b2, sigma_param, *, h_pad=128):
    """One-time (init / param-update time) layout.

    torch Linear weights are (out_features, in_features), which is exactly the
    layout the transposed kernel wants -> no transpose, only zero-padding.
    Also precomputes scale = sqrt(softplus(sigma)) (independent of x).
    """
    H, S = w1.shape
    A, _ = w2.shape
    a_pad = _round_up(max(A, 1), 8)

    w1p = jnp.zeros((h_pad, S), jnp.float32).at[:H, :].set(jnp.asarray(w1, jnp.float32))
    b1p = jnp.zeros((h_pad, 1), jnp.float32).at[:H, 0].set(jnp.asarray(b1, jnp.float32))
    w2p = jnp.zeros((a_pad, h_pad), jnp.float32).at[:A, :H].set(
        jnp.asarray(w2, jnp.float32)).astype(jnp.bfloat16)
    b2p = jnp.zeros((a_pad, 1), jnp.float32).at[:A, 0].set(jnp.asarray(b2, jnp.float32))

    scale = jnp.sqrt(jnp.logaddexp(0.0, jnp.asarray(sigma_param, jnp.float32)))
    return w1p, b1p, w2p, b2p, scale


@functools.partial(jax.jit, static_argnames=("action_space", "block_b"))
def policy_forward(x, w1_pad, b1_pad, w2_pad, b2_pad, scale, *,
                   action_space, block_b=2048):
    """Returns (loc, scale) — the parameters of the Normal from Policy.forward."""
    B, S = x.shape
    a_pad, hp = w2_pad.shape

    # Batch is the lane axis: pad B up to a multiple of the batch tile (>=128).
    b_pad = _round_up(B, 128)
    tb = min(block_b, b_pad)
    b_pad = _round_up(b_pad, tb)
    grid = (pl.cdiv(b_pad, tb),)

    x_t = jnp.zeros((S, b_pad), jnp.float32).at[:, :B].set(
        jnp.asarray(x, jnp.float32).T)

    mu_t = pl.pallas_call(
        policy_mu_kernel,
        out_shape=jax.ShapeDtypeStruct((a_pad, b_pad), jnp.float32),
        grid=grid,
        in_specs=[
            pl.BlockSpec((S, tb), lambda i: (0, i)),        # x_t: tiled over batch
            pl.BlockSpec((hp, S), lambda i: (0, 0)),        # W1: resident
            pl.BlockSpec((hp, 1), lambda i: (0, 0)),        # b1: resident
            pl.BlockSpec((a_pad, hp), lambda i: (0, 0)),    # W2 (bf16): resident
            pl.BlockSpec((a_pad, 1), lambda i: (0, 0)),     # b2: resident
        ],
        out_specs=pl.BlockSpec((a_pad, tb), lambda i: (0, i)),
        compiler_params=pltpu.CompilerParams(
            dimension_semantics=("parallel",)),             # v7x: shard batch over 2 TCs
    )(x_t, w1_pad, b1_pad, w2_pad, b2_pad)

    mu = mu_t[:action_space, :B].T                          # (B, action_space)
    return mu, jnp.broadcast_to(scale, mu.shape)


def reference_forward(x, w1, b1, w2, b2, sigma_param):
    h = jnp.maximum(x @ w1.T + b1, 0.0)
    mu = h @ w2.T + b2
    scale = jnp.sqrt(jnp.logaddexp(0.0, sigma_param))
    return mu, jnp.broadcast_to(scale, mu.shape)


if __name__ == "__main__":
    # Small shapes consistent with the module: state_space=4, action_space=2, hidden=64.
    batch, state_space, action_space, hidden = 8, 4, 2, 64

    key = jax.random.PRNGKey(0)
    k1, k2, kx = jax.random.split(key, 3)

    # init_weights(): Linear weights ~ Normal(0, 1), biases zero; sigma param = 10.0
    w1 = jax.random.normal(k1, (hidden, state_space), dtype=jnp.float32)
    b1 = jnp.zeros((hidden,), dtype=jnp.float32)
    w2 = jax.random.normal(k2, (action_space, hidden), dtype=jnp.float32)
    b2 = jnp.zeros((action_space,), dtype=jnp.float32)
    sigma_param = jnp.array([10.0], dtype=jnp.float32)

    x = jax.random.normal(kx, (batch, state_space), dtype=jnp.float32)

    # One-time parameter layout + scale hoist (out of the per-call hot path).
    w1_pad, b1_pad, w2_pad, b2_pad, scale = prepare_params(w1, b1, w2, b2, sigma_param)

    mu, scale_b = policy_forward(x, w1_pad, b1_pad, w2_pad, b2_pad, scale,
                                 action_space=action_space)
    mu = jax.block_until_ready(mu)
    scale_b = jax.block_until_ready(scale_b)

    mu_ref, scale_ref = reference_forward(x, w1, b1, w2, b2, sigma_param)
    # fc2 uses bf16 MXU inputs (f32 accumulation) -> compare against the f32
    # reference with a bf16-appropriate tolerance.
    assert jnp.allclose(mu, mu_ref, rtol=2e-2, atol=2e-1), "mu mismatch"
    assert jnp.allclose(scale_b, scale_ref, rtol=1e-6, atol=1e-6), "scale mismatch"

    # TODO(synk): torch.distributions.Normal object itself has no Pallas equivalent;
    # the kernel/wrapper return its (loc, scale) parameters instead.
    print("KERNEL_OK")
</pallas_src>

<mosaic_0001>
module attributes {stable_mosaic.version = 11 : i64} {
  func.func @policy_mu_kernel(%arg0: i32, %arg1: memref<4x128xf32, #tpu.memory_space<vmem>>, %arg2: memref<128x4xf32, #tpu.memory_space<vmem>>, %arg3: memref<128x1xf32, #tpu.memory_space<vmem>>, %arg4: memref<8x128xbf16, #tpu.memory_space<vmem>>, %arg5: memref<8x1xf32, #tpu.memory_space<vmem>>, %arg6: memref<8x128xf32, #tpu.memory_space<vmem>>) attributes {dimension_semantics = [#tpu.dimension_semantics<parallel>], iteration_bounds = array<i64: 1>, scalar_prefetch = 0 : i64, scratch_operands = 0 : i64, tpu.core_type = #tpu.core_type<tc>, window_params = [{transform_indices = @transform_0, window_bounds = array<i64: 4, 128>}, {pipeline_mode = #tpu.pipeline_mode<synchronous>, transform_indices = @transform_1, window_bounds = array<i64: 128, 4>}, {pipeline_mode = #tpu.pipeline_mode<synchronous>, transform_indices = @transform_2, window_bounds = array<i64: 128, 1>}, {pipeline_mode = #tpu.pipeline_mode<synchronous>, transform_indices = @transform_3, window_bounds = array<i64: 8, 128>}, {pipeline_mode = #tpu.pipeline_mode<synchronous>, transform_indices = @transform_4, window_bounds = array<i64: 8, 1>}, {transform_indices = @transform_5, window_bounds = array<i64: 8, 128>}]} {
    %c0 = arith.constant 0 : index
    %c0_0 = arith.constant 0 : index
    %0 = vector.load %arg1[%c0, %c0_0] : memref<4x128xf32, #tpu.memory_space<vmem>>, vector<4x128xf32>
    %c0_1 = arith.constant 0 : index
    %c0_2 = arith.constant 0 : index
    %1 = vector.load %arg2[%c0_1, %c0_2] : memref<128x4xf32, #tpu.memory_space<vmem>>, vector<128x4xf32>
    %c0_3 = arith.constant 0 : index
    %c0_4 = arith.constant 0 : index
    %2 = vector.load %arg3[%c0_3, %c0_4] : memref<128x1xf32, #tpu.memory_space<vmem>>, vector<128x1xf32>
    %3 = vector.extract_strided_slice %1 {offsets = [0, 0], sizes = [128, 1], strides = [1, 1]} : vector<128x4xf32> to vector<128x1xf32>
    %4 = vector.extract_strided_slice %0 {offsets = [0, 0], sizes = [1, 128], strides = [1, 1]} : vector<4x128xf32> to vector<1x128xf32>
    %5 = vector.broadcast %3 : vector<128x1xf32> to vector<128x128xf32>
    %6 = vector.broadcast %4 : vector<1x128xf32> to vector<128x128xf32>
    %7 = arith.mulf %5, %6 : vector<128x128xf32>
    %8 = vector.broadcast %2 : vector<128x1xf32> to vector<128x128xf32>
    %9 = arith.addf %8, %7 : vector<128x128xf32>
    %10 = vector.extract_strided_slice %1 {offsets = [0, 1], sizes = [128, 1], strides = [1, 1]} : vector<128x4xf32> to vector<128x1xf32>
    %11 = vector.extract_strided_slice %0 {offsets = [1, 0], sizes = [1, 128], strides = [1, 1]} : vector<4x128xf32> to vector<1x128xf32>
    %12 = vector.broadcast %10 : vector<128x1xf32> to vector<128x128xf32>
    %13 = vector.broadcast %11 : vector<1x128xf32> to vector<128x128xf32>
    %14 = arith.mulf %12, %13 : vector<128x128xf32>
    %15 = arith.addf %9, %14 : vector<128x128xf32>
    %16 = vector.extract_strided_slice %1 {offsets = [0, 2], sizes = [128, 1], strides = [1, 1]} : vector<128x4xf32> to vector<128x1xf32>
    %17 = vector.extract_strided_slice %0 {offsets = [2, 0], sizes = [1, 128], strides = [1, 1]} : vector<4x128xf32> to vector<1x128xf32>
    %18 = vector.broadcast %16 : vector<128x1xf32> to vector<128x128xf32>
    %19 = vector.broadcast %17 : vector<1x128xf32> to vector<128x128xf32>
    %20 = arith.mulf %18, %19 : vector<128x128xf32>
    %21 = arith.addf %15, %20 : vector<128x128xf32>
    %22 = vector.extract_strided_slice %1 {offsets = [0, 3], sizes = [128, 1], strides = [1, 1]} : vector<128x4xf32> to vector<128x1xf32>
    %23 = vector.extract_strided_slice %0 {offsets = [3, 0], sizes = [1, 128], strides = [1, 1]} : vector<4x128xf32> to vector<1x128xf32>
    %24 = vector.broadcast %22 : vector<128x1xf32> to vector<128x128xf32>
    %25 = vector.broadcast %23 : vector<1x128xf32> to vector<128x128xf32>
    %26 = arith.mulf %24, %25 : vector<128x128xf32>
    %27 = arith.addf %21, %26 : vector<128x128xf32>
    %cst = arith.constant 0.000000e+00 : f32
    %28 = vector.broadcast %cst : f32 to vector<128x128xf32>
    %29 = arith.maximumf %27, %28 : vector<128x128xf32>
    %c0_5 = arith.constant 0 : index
    %c0_6 = arith.constant 0 : index
    %30 = vector.load %arg4[%c0_5, %c0_6] : memref<8x128xbf16, #tpu.memory_space<vmem>>, vector<8x128xbf16>
    %31 = arith.truncf %29 : vector<128x128xf32> to vector<128x128xbf16>
    %cst_7 = arith.constant dense<0.000000e+00> : vector<8x128xf32>
    %32 = tpu.matmul %30, %31, %cst_7 {dimension_numbers = #tpu.dot_dimension_numbers<[1], [0], [0], [1], [0, 0, 1, 1], [], []>} : vector<8x128xbf16>, vector<128x128xbf16>, vector<8x128xf32> -> vector<8x128xf32>
    %c0_8 = arith.constant 0 : index
    %c0_9 = arith.constant 0 : index
    %33 = vector.load %arg5[%c0_8, %c0_9] : memref<8x1xf32, #tpu.memory_space<vmem>>, vector<8x1xf32>
    %34 = vector.broadcast %33 : vector<8x1xf32> to vector<8x128xf32>
    %35 = arith.addf %32, %34 : vector<8x128xf32>
    %c0_10 = arith.constant 0 : index
    %c0_11 = arith.constant 0 : index
    %36 = vector.load %arg6[%c0_10, %c0_11] : memref<8x128xf32, #tpu.memory_space<vmem>>, vector<8x128xf32>
    tpu.vector_store %arg6[%c0_10, %c0_11], %35 {strides = array<i32>} : memref<8x128xf32, #tpu.memory_space<vmem>>, vector<8x128xf32>,
    return
  }
  func.func @transform_0(%arg0: i32) -> (i32, i32) {
    %c0_i32 = arith.constant 0 : i32
    %c0_i32_0 = arith.constant 0 : i32
    return %c0_i32, %arg0 : i32, i32
  }
  func.func @transform_1(%arg0: i32) -> (i32, i32) {
    %c0_i32 = arith.constant 0 : i32
    %c0_i32_0 = arith.constant 0 : i32
    %c0_i32_1 = arith.constant 0 : i32
    return %c0_i32, %c0_i32_0 : i32, i32
  }
  func.func @transform_2(%arg0: i32) -> (i32, i32) {
    %c0_i32 = arith.constant 0 : i32
    %c0_i32_0 = arith.constant 0 : i32
    %c0_i32_1 = arith.constant 0 : i32
    return %c0_i32, %c0_i32_0 : i32, i32
  }
  func.func @transform_3(%arg0: i32) -> (i32, i32) {
    %c0_i32 = arith.constant 0 : i32
    %c0_i32_0 = arith.constant 0 : i32
    %c0_i32_1 = arith.constant 0 : i32
    return %c0_i32, %c0_i32_0 : i32, i32
  }
  func.func @transform_4(%arg0: i32) -> (i32, i32) {
    %c0_i32 = arith.constant 0 : i32
    %c0_i32_0 = arith.constant 0 : i32
    %c0_i32_1 = arith.constant 0 : i32
    return %c0_i32, %c0_i32_0 : i32, i32
  }
  func.func @transform_5(%arg0: i32) -> (i32, i32) {
    %c0_i32 = arith.constant 0 : i32
    %c0_i32_0 = arith.constant 0 : i32
    return %c0_i32, %arg0 : i32, i32
  }
}

</mosaic_0001>

<bundles_post_ra>
// kernel: policy_forward.1
= control target key start
LH: loop header
LB: loop body
LE: loop exit
PB: predicated region body
PF: predicated region fallthrough
CT: control target
= control target key end

     0   :  { %v704_v0 = vmov 2   ;;  %v705_v1 = vmov 0   ;;  %v706_v9 = vmov 1   ;;  %v707_v18 = vmov 3   ;;  %s1125_s1 = inlined_call_operand.vmem [shape: f32[128,4], index: 1, kind: input, shape index: {}]   ;;  %s1126_s2 = inlined_call_operand.vmem [shape: f32[128,1], index: 2, kind: input, shape index: {}]   ;;  %s1127_s0 = inlined_call_operand.vmem [shape: f32[4,128], index: 0, kind: input, shape index: {}]   ;;  %s1128_s4 = inlined_call_operand.vmem [shape: f32[8,1], index: 4, kind: input, shape index: {}]   ;;  %s1129_s3 = inlined_call_operand.vmem [shape: bf16[8,128], index: 3, kind: input, shape index: {}]   ;;  %s1130_s5 = inlined_call_operand.vmem [shape: f32[8,128], index: 5, kind: output, shape index: {}]  }
   0x1   :  { %664 = vset.pattern.permute.xlu0 %v704_v0  ;;  %661 = vset.pattern.permute.xlu1 %v705_v1  ;;  %v745_v2 = vld [vmem:[%s1125_s1 + $0x70] sm:$0xff]  ;;  %v762_v5 = vld [vmem:[%s1125_s1 + $0x18] sm:$0xff]  ;;  %v34_v11 = vld [vmem:[%s1125_s1 + $0x60] sm:$0xff]  ;;  %v708_v29 = vmov 0.0   ;;  %v134_v58 = vlaneseq  ;;  %vm709_vm0 = vmmov 0  }
   0x2   :  { %v750_v3 = vld [vmem:[%s1125_s1 + $0x10] sm:$0xff]  ;;  %407 = vperm.xlu0 %664, %v745_v2   ;;  %v769_v6 = vld [vmem:[%s1125_s1 + $0x38] sm:$0xff]  ;;  %v796_v12 = vld [vmem:[%s1125_s1 + $0x20] sm:$0xff]  ;;  %635 = vmatprep.subr.bf16.mxu0 %v708_v29 }
   0x3   :  { %66 = vperm.xlu1 %661, %v750_v3   ;;  %v757_v4 = vld [vmem:[%s1125_s1 + $0x50] sm:$0xff]  ;;  %v37_v8 = vld [vmem:[%s1125_s1 + $0x78] sm:$0xff]  ;;  %v35_v13 = vld [vmem:[%s1125_s1 + $0x68] sm:$0xff]  ;;  %v135_v61 = vshrl.u32 %v134_v58, 7  ;;  %651 = vmatprep.mubr.msk.bf16.mxu0 %vm709_vm0, %v708_v29 }
   0x4   :  { %v52_v7 = vld [vmem:[%s1126_s2 + $0x70] sm:$0xff]  ;;  %v807_v14 = vld [vmem:[%s1125_s1] sm:$0xff]  ;;  %v818_v16 = vld [vmem:[%s1125_s1 + $0x8] sm:$0xff] }
   0x5   :  { %v786_v10 = vld [vmem:[%s1125_s1 + $0x30] sm:$0xff]  ;;  %v50_v15 = vld [vmem:[%s1126_s2 + $0x60] sm:$0xff]  ;;  %v53_v17 = vld [vmem:[%s1126_s2 + $0x78] sm:$0xff]  ;;  %v136_v63 = vsub.s32 0, %v135_v61 }
   0x6   :  { %391 = vperm.xlu0 %664, %v757_v4   ;;  %v51_v19 = vld [vmem:[%s1126_s2 + $0x68] sm:$0xff]  ;;  %v33_v20 = vld [vmem:[%s1125_s1 + $0x58] sm:$0xff]  ;;  %v48_v21 = vld [vmem:[%s1126_s2 + $0x50] sm:$0xff] }
   0x7   :  { %71 = vperm.xlu1 %661, %v762_v5   ;;  %v47_v22 = vld [vmem:[%s1126_s2 + $0x48] sm:$0xff]  ;;  %v49_v23 = vld [vmem:[%s1126_s2 + $0x58] sm:$0xff]  ;;  %v44_v24 = vld [vmem:[%s1126_s2 + $0x30] sm:$0xff] }
   0x8   :  { %v40_v25 = vld [vmem:[%s1126_s2 + $0x10] sm:$0xff]  ;;  %v39_v26 = vld [vmem:[%s1126_s2 + $0x8] sm:$0xff]  ;;  %v30_v27 = vld [vmem:[%s1125_s1 + $0x40] sm:$0xff] }
   0x9   :  { %v31_v28 = vld [vmem:[%s1125_s1 + $0x48] sm:$0xff]  ;;  %v46_v30 = vld [vmem:[%s1126_s2 + $0x40] sm:$0xff]  ;;  %v45_v35 = vld [vmem:[%s1126_s2 + $0x38] sm:$0xff] }
   0xa   :  { %379 = vperm.xlu0 %664, %v769_v6   ;;  %v913_v42 = vld [vmem:[%s1125_s1 + $0x28] sm:$0xff]  ;;  %v42_v48 = vld [vmem:[%s1126_s2 + $0x20] sm:$0xff] }
   0xb   :  { %126 = vperm.xlu1 %661, %v745_v2   ;;  %v43_v51 = vld [vmem:[%s1126_s2 + $0x28] sm:$0xff] }
   0xe   :  { %686 = vset.pattern.permute.xlu0 %v706_v9 }
   0xf   :  { %226 = vperm.xlu1 %661, %v52_v7   ;;  %311 = vperm.xlu0 %686, %v37_v8   ;;  %v416_v7 = vsub.s32 2, %v135_v61 }
  0x13   :  { %662 = vset.pattern.permute.xlu1 %v706_v9  ;;  %291 = vperm.xlu0 %686, %v757_v4  }
  0x14   :  { %307 = vperm.xlu1 %662, %v745_v2  }
  0x17   :  { %275 = vperm.xlu0 %686, %v786_v10  }
  0x18   :  { %663 = vset.pattern.permute.xlu1 %v705_v1 }
  0x19   :  { %116 = vperm.xlu1 %663, %v34_v11  }
  0x1b   :  { %267 = vperm.xlu0 %686, %v796_v12  }
  0x1d   :  { %121 = vperm.xlu1 %663, %v35_v13  }
  0x1f   :  { %263 = vperm.xlu0 %686, %v762_v5  }
  0x21   :  { %665 = vset.pattern.permute.xlu1 %v704_v0 }
  0x22   :  { %411 = vperm.xlu1 %665, %v37_v8  }
  0x23   :  { %693 = vset.pattern.permute.xlu0 %v705_v1 }
  0x24   :  { %56 = vperm.xlu0 %693, %v807_v14  }
  0x26   :  { %666 = vset.pattern.permute.xlu1 %v705_v1 }
  0x27   :  { %216 = vperm.xlu1 %666, %v50_v15  }
  0x28   :  { %61 = vperm.xlu0 %693, %v818_v16  }
  0x2b   :  { %667 = vset.pattern.permute.xlu1 %v706_v9 }
  0x2c   :  { %299 = vperm.xlu1 %667, %v34_v11   ;;  %76 = vperm.xlu0 %693, %v796_v12  }
  0x30   :  { %303 = vperm.xlu1 %667, %v35_v13   ;;  %131 = vperm.xlu0 %693, %v37_v8  }
  0x34   :  { %668 = vset.pattern.permute.xlu1 %v707_v18  ;;  %231 = vperm.xlu0 %693, %v53_v17  }
  0x35   :  { %511 = vperm.xlu1 %668, %v37_v8  }
  0x38   :  { %221 = vperm.xlu0 %693, %v51_v19  }
  0x39   :  { %669 = vset.pattern.permute.xlu1 %v705_v1 }
  0x3a   :  { %106 = vperm.xlu1 %669, %v757_v4  }
  0x3c   :  { %111 = vperm.xlu0 %693, %v33_v20  }
  0x3e   :  { %670 = vset.pattern.permute.xlu1 %v704_v0 }
  0x3f   :  { %399 = vperm.xlu1 %670, %v34_v11  }
  0x40   :  { %206 = vperm.xlu0 %693, %v48_v21  }
  0x43   :  { %403 = vperm.xlu1 %670, %v35_v13  }
  0x44   :  { %201 = vperm.xlu0 %693, %v47_v22  }
  0x47   :  { %671 = vset.pattern.permute.xlu1 %v705_v1 }
  0x48   :  { %211 = vperm.xlu1 %671, %v49_v23   ;;  %91 = vperm.xlu0 %693, %v769_v6  }
  0x4c   :  { %672 = vset.pattern.permute.xlu1 %v706_v9  ;;  %186 = vperm.xlu0 %693, %v44_v24  }
  0x4d   :  { %295 = vperm.xlu1 %672, %v33_v20  }
  0x50   :  { %166 = vperm.xlu0 %693, %v40_v25  }
  0x51   :  { %673 = vset.pattern.permute.xlu1 %v707_v18 }
  0x52   :  { %499 = vperm.xlu1 %673, %v34_v11  }
  0x54   :  { %161 = vperm.xlu0 %693, %v39_v26  }
  0x56   :  { %674 = vset.pattern.permute.xlu1 %v705_v1 }
  0x57   :  { %96 = vperm.xlu1 %674, %v30_v27  }
  0x58   :  { %697 = vset.pattern.permute.xlu0 %v707_v18 }
  0x59   :  { %507 = vperm.xlu0 %697, %v745_v2   ;;  %v316_v2 = vsub.s32 1, %v135_v61 }
  0x5b   :  { %101 = vperm.xlu1 %674, %v31_v28  }
  0x5d   :  { %503 = vperm.xlu0 %697, %v35_v13  }
  0x5f   :  { %675 = vset.pattern.permute.xlu1 %v704_v0 }
  0x60   :  { %395 = vperm.xlu1 %675, %v33_v20  }
  0x61   :  { %491 = vperm.xlu0 %697, %v757_v4  }
  0x64   :  { %676 = vset.pattern.permute.xlu1 %v705_v1 }
  0x65   :  { %196 = vperm.xlu1 %676, %v46_v30   ;;  %487 = vperm.xlu0 %697, %v31_v28  }
  0x69   :  { %677 = vset.pattern.permute.xlu1 %v706_v9  ;;  %479 = vperm.xlu0 %697, %v769_v6  }
  0x6a   :  { %283 = vperm.xlu1 %677, %v30_v27  }
  0x6d   :  { %459 = vperm.xlu0 %697, %v750_v3  }
  0x6e   :  { %287 = vperm.xlu1 %677, %v31_v28  }
  0x71   :  { %699 = vset.pattern.permute.xlu0 %v704_v0 }
  0x72   :  { %678 = vset.pattern.permute.xlu1 %v707_v18  ;;  %359 = vperm.xlu0 %699, %v750_v3  }
  0x73   :  { %495 = vperm.xlu1 %678, %v33_v20  }
  0x76   :  { %355 = vperm.xlu0 %699, %v818_v16  }
  0x77   :  { %679 = vset.pattern.permute.xlu1 %v705_v1 }
  0x78   :  { %86 = vperm.xlu1 %679, %v786_v10  }
  0x7a   :  { %703 = vset.pattern.permute.xlu0 %v705_v1 }
  0x7c   :  { %680 = vset.pattern.permute.xlu1 %v704_v0 }
  0x7d   :  { %383 = vperm.xlu1 %680, %v30_v27   ;;  %v887_v32 = vpop.permute.xlu0 %407 }
  0x7e   :  { %v885_v31 = vpop.permute.xlu1 %66 }
  0x81   :  { %387 = vperm.xlu1 %680, %v31_v28   ;;  %v891_v34 = vpop.permute.xlu0 %391 }
  0x82   :  { %v889_v33 = vpop.permute.xlu1 %71 }
  0x85   :  { %681 = vset.pattern.permute.xlu1 %v705_v1  ;;  %v899_v37 = vpop.permute.xlu0 %379 }
  0x86   :  { %191 = vperm.xlu1 %681, %v45_v35   ;;  %v897_v36 = vpop.permute.xlu1 %126 }
  0x8a   :  { %682 = vset.pattern.permute.xlu1 %v706_v9  ;;  %v902_v38 = vpop.permute.xlu1 %226  ;;  %v905_v39 = vpop.permute.xlu0 %311 }
  0x8b   :  { %279 = vperm.xlu1 %682, %v769_v6   ;;  %v21_v6 = vld [vmem:[%s1127_s0] sm:$0xf] }
  0x8c   :  { %v965_v11 = vrot.slane %v21_v6, %v136_v63  ;;  %v967_v13 = vrot.slane %v21_v6, %v316_v2  ;;  %v970_v17 = vrot.slane %v21_v6, %v416_v7 }
  0x8e   :  { %v292_v41 = vpop.permute.xlu0 %291  ;;  %v428_v22 = vmul.f32 %v970_v17, %v891_v34  ;;  %v152_v58 = vmul.f32 %v965_v11, %v897_v36  ;;  %v432_v36 = vmul.f32 %v970_v17, %v887_v32 }
  0x8f   :  { %683 = vset.pattern.permute.xlu1 %v707_v18  ;;  %v908_v40 = vpop.permute.xlu1 %307  ;;  %v328_v19 = vmul.f32 %v967_v13, %v292_v41 }
  0x90   :  { %483 = vperm.xlu1 %683, %v30_v27   ;;  %v332_v63 = vmul.f32 %v967_v13, %v908_v40 }
  0x92   :  { %v915_v43 = vpop.permute.xlu0 %275 }
  0x94   :  { %684 = vset.pattern.permute.xlu1 %v705_v1  ;;  %v918_v44 = vpop.permute.xlu1 %116 }
  0x95   :  { %81 = vperm.xlu1 %684, %v913_v42   ;;  %v150_v7 = vmul.f32 %v965_v11, %v918_v44 }
  0x96   :  { %v921_v45 = vpop.permute.xlu0 %267 }
  0x98   :  { %v923_v46 = vpop.permute.xlu1 %121 }
  0x99   :  { %685 = vset.pattern.permute.xlu1 %v704_v0 }
  0x9a   :  { %375 = vperm.xlu1 %685, %v786_v10   ;;  %v927_v47 = vpop.permute.xlu0 %263 }
  0x9d   :  { %v932_v49 = vpop.permute.xlu1 %411 }
  0x9e   :  { %687 = vset.pattern.permute.xlu1 %v705_v1 }
  0x9f   :  { %176 = vperm.xlu1 %687, %v42_v48   ;;  %v935_v50 = vpop.permute.xlu0 %56 }
  0xa2   :  { %v940_v52 = vpop.permute.xlu1 %216 }
  0xa3   :  { %181 = vperm.xlu1 %687, %v43_v51   ;;  %v62_v53 = vpop.permute.xlu0 %61  ;;  %v516_v51 = vsub.s32 3, %v135_v61 }
  0xa7   :  { %688 = vset.pattern.permute.xlu1 %v706_v9  ;;  %v943_v54 = vpop.permute.xlu1 %299  ;;  %v946_v55 = vpop.permute.xlu0 %76 }
  0xa8   :  { %271 = vperm.xlu1 %688, %v913_v42  }
  0xab   :  { %v948_v56 = vpop.permute.xlu1 %303  ;;  %v132_v57 = vpop.permute.xlu0 %131 }
  0xac   :  { %689 = vset.pattern.permute.xlu1 %v707_v18  ;;  %v153_v35 = vmul.f32 %v965_v11, %v132_v57 }
  0xad   :  { %475 = vperm.xlu1 %689, %v786_v10   ;;  %v41_v10 = vld [vmem:[%s1126_s2 + $0x18] sm:$0xff] }
  0xaf   :  { %v232_v60 = vpop.permute.xlu0 %231 }
  0xb0   :  { %v952_v59 = vpop.permute.xlu1 %511  ;;  %v249_v48 = vadd.f32 %v232_v60, %v153_v35  ;;  %v1008_v60 = vrot.slane %v21_v6, %v516_v51  ;;  %v246_v6 = vadd.f32 %v940_v52, %v150_v7 }
  0xb1   :  { %690 = vset.pattern.permute.xlu1 %v704_v0 }
  0xb2   :  { %367 = vperm.xlu1 %690, %v796_v12  }
  0xb3   :  { %v222_v62 = vpop.permute.xlu0 %221 }
  0xb5   :  { %v107_v4 = vpop.permute.xlu1 %106 }
  0xb6   :  { %371 = vperm.xlu1 %690, %v913_v42   ;;  %v148_v20 = vmul.f32 %v965_v11, %v107_v4 }
  0xb7   :  { %v960_v8 = vpop.permute.xlu0 %111 }
  0xba   :  { %691 = vset.pattern.permute.xlu1 %v705_v1  ;;  %v400_v15 = vpop.permute.xlu1 %399 }
  0xbb   :  { %171 = vperm.xlu1 %691, %v41_v10   ;;  %v207_v21 = vpop.permute.xlu0 %206 }
  0xbc   :  { %v244_v23 = vadd.f32 %v207_v21, %v148_v20  ;;  %v533_v20 = vmul.f32 %v1008_v60, %v952_v59  ;;  %v430_v21 = vmul.f32 %v970_v17, %v400_v15 }
  0xbe   :  { %v404_v24 = vpop.permute.xlu1 %403  ;;  %v344_v25 = vadd.f32 %v328_v19, %v244_v23 }
  0xbf   :  { %692 = vset.pattern.permute.xlu1 %v706_v9  ;;  %v978_v26 = vpop.permute.xlu0 %201 }
  0xc0   :  { %259 = vperm.xlu1 %692, %v750_v3   ;;  %v980_v27 = vadd.f32 %v428_v22, %v344_v25  ;;  %v333_v3 = vmul.f32 %v967_v13, %v905_v39  ;;  %v248_v39 = vadd.f32 %v902_v38, %v152_v58  ;;  %v330_v38 = vmul.f32 %v967_v13, %v943_v54 }
  0xc2   :  { %v349_v2 = vadd.f32 %v333_v3, %v249_v48  ;;  %v348_v40 = vadd.f32 %v332_v63, %v248_v39  ;;  %v346_v54 = vadd.f32 %v330_v38, %v246_v6 }
  0xc3   :  { %v982_v28 = vpop.permute.xlu1 %211  ;;  %v985_v30 = vpop.permute.xlu0 %91 }
  0xc4   :  { %694 = vset.pattern.permute.xlu1 %v707_v18  ;;  %v448_v23 = vadd.f32 %v432_v36, %v348_v40 }
  0xc5   :  { %467 = vperm.xlu1 %694, %v796_v12   ;;  %v139_v12 = vmul.f32 %v965_v11, %v62_v53  ;;  %v38_v53 = vld [vmem:[%s1126_s2] sm:$0xff] }
  0xc7   :  { %v991_v41 = vpop.permute.xlu0 %186 }
  0xc8   :  { %v989_v34 = vpop.permute.xlu1 %295 }
  0xc9   :  { %471 = vperm.xlu1 %694, %v913_v42   ;;  %v433_v42 = vmul.f32 %v970_v17, %v932_v49  ;;  %v151_v49 = vmul.f32 %v965_v11, %v923_v46  ;;  %v331_v46 = vmul.f32 %v967_v13, %v948_v56  ;;  %v329_v7 = vmul.f32 %v967_v13, %v989_v34 }
  0xcb   :  { %v1000_v57 = vpop.permute.xlu0 %166  ;;  %v449_v10 = vadd.f32 %v433_v42, %v349_v2  ;;  %v247_v44 = vadd.f32 %v222_v62, %v151_v49  ;;  %v446_v62 = vadd.f32 %v430_v21, %v346_v54 }
  0xcd   :  { %695 = vset.pattern.permute.xlu1 %v704_v0  ;;  %v500_v4 = vpop.permute.xlu1 %499  ;;  %v549_v25 = vadd.f32 %v533_v20, %v449_v10  ;;  %v347_v59 = vadd.f32 %v331_v46, %v247_v44 }
  0xce   :  { %363 = vperm.xlu1 %695, %v762_v5   ;;  %v530_v35 = vmul.f32 %v1008_v60, %v500_v4 }
  0xcf   :  { %v162_v61 = vpop.permute.xlu0 %161  ;;  %v565_v51 = vmax.f32 %v549_v25, 0.0 }
  0xd0   :  { %v1019_v19 = vadd.f32 %v162_v61, %v139_v12  ;;  %v546_v63 = vadd.f32 %v530_v35, %v446_v62  ;;  %v149_v61 = vmul.f32 %v965_v11, %v960_v8 }
  0xd2   :  { %696 = vset.pattern.permute.xlu1 %v705_v1  ;;  %v1024_v32 = vpop.permute.xlu1 %96  ;;  %v431_v1 = vmul.f32 %v970_v17, %v404_v24  ;;  %v562_v39 = vmax.f32 %v546_v63, 0.0 }
  0xd3   :  { %156 = vperm.xlu1 %696, %v38_v53  }
  0xd4   :  { %v508_v22 = vpop.permute.xlu0 %507  ;;  %v447_v58 = vadd.f32 %v431_v1, %v347_v59 }
  0xd5   :  { %v532_v52 = vmul.f32 %v1008_v60, %v508_v22 }
  0xd6   :  { %v102_v3 = vpop.permute.xlu1 %101 }
  0xd7   :  { %698 = vset.pattern.permute.xlu1 %v706_v9  ;;  %v548_v48 = vadd.f32 %v532_v52, %v448_v23  ;;  %v145_v52 = vmul.f32 %v965_v11, %v985_v30 }
  0xd8   :  { %251 = vperm.xlu1 %698, %v807_v14   ;;  %v504_v15 = vpop.permute.xlu0 %503 }
  0xd9   :  { %v564_v12 = vmax.f32 %v548_v48, 0.0  ;;  %v531_v56 = vmul.f32 %v1008_v60, %v504_v15  ;;  %v146_v48 = vmul.f32 %v965_v11, %v1024_v32 }
  0xdb   :  { %v396_v24 = vpop.permute.xlu1 %395  ;;  %v547_v2 = vadd.f32 %v531_v56, %v447_v58  ;;  %v574_v4 = vpack.c.bf16 %v565_v51, %v564_v12 }
  0xdc   :  { %255 = vperm.xlu1 %698, %v818_v16   ;;  %v492_v53 = vpop.permute.xlu0 %491  ;;  %v429_v10 = vmul.f32 %v970_v17, %v396_v24 }
  0xdd   :  { %v563_v42 = vmax.f32 %v547_v2, 0.0  ;;  %636 = vmatpush3.bf16.msra.mxu0 %v574_v4  ;;  %v528_v49 = vmul.f32 %v1008_v60, %v492_v53 }
  0xde   :  { %637 = vmatprep.subr.bf16.mxu0 %v708_v29 }
  0xdf   :  { %v573_v36 = vpack.c.bf16 %v563_v42, %v562_v39  ;;  %v544_v8 = vadd.f32 %v528_v49, %v980_v27  ;;  %v322_v49 = vmul.f32 %v967_v13, %v921_v45 }
  0xe0   :  { %v197_v9 = vpop.permute.xlu1 %196  ;;  %700 = vset.pattern.permute.xlu1 %v707_v18  ;;  %v488_v62 = vpop.permute.xlu0 %487 }
  0xe1   :  { %463 = vperm.xlu1 %700, %v762_v5   ;;  %638 = vmatpush3.bf16.msra.mxu0 %v573_v36  ;;  %v245_v5 = vadd.f32 %v982_v28, %v149_v61  ;;  %v560_v21 = vmax.f32 %v544_v8, 0.0  ;;  %v324_v28 = vmul.f32 %v967_v13, %v915_v43  ;;  %v147_v43 = vmul.f32 %v965_v11, %v102_v3 }
  0xe2   :  { %639 = vmatprep.subr.bf16.mxu0 %v708_v29  ;;  %v242_v12 = vadd.f32 %v197_v9, %v146_v48  ;;  %v527_v30 = vmul.f32 %v1008_v60, %v488_v62 }
  0xe4   :  { %v480_v8 = vpop.permute.xlu0 %479 }
  0xe5   :  { %v284_v40 = vpop.permute.xlu1 %283  ;;  %701 = vset.pattern.permute.xlu1 %v704_v0  ;;  %v345_v0 = vadd.f32 %v329_v7, %v245_v5 }
  0xe6   :  { %351 = vperm.xlu1 %701, %v807_v14   ;;  %v326_v15 = vmul.f32 %v967_v13, %v284_v40 }
  0xe7   :  { %v445_v20 = vadd.f32 %v429_v10, %v345_v0 }
  0xe8   :  { %v342_v4 = vadd.f32 %v326_v15, %v242_v12 }
  0xe9   :  { %v288_v38 = vpop.permute.xlu1 %287 }
  0xea   :  { %702 = vset.pattern.permute.xlu1 %v707_v18  ;;  %v327_v35 = vmul.f32 %v967_v13, %v288_v38 }
  0xeb   :  { %451 = vperm.xlu1 %702, %v807_v14  }
  0xee   :  { %v496_v6 = vpop.permute.xlu1 %495 }
  0xef   :  { %v529_v44 = vmul.f32 %v1008_v60, %v496_v6  ;;  %455 = vperm.xlu1 %702, %v818_v16   ;;  %v575_v16 = vld [vmem:[%s1128_s4] sm:$0xff] }
  0xf0   :  { %578 = vperm.xlu0 %703, %v575_v16  }
  0xf1   :  { %v545_v34 = vadd.f32 %v529_v44, %v445_v20 }
  0xf3   :  { %v561_v18 = vmax.f32 %v545_v34, 0.0  ;;  %v87_v54 = vpop.permute.xlu1 %86  ;;  %v525_v34 = vmul.f32 %v1008_v60, %v480_v8 }
  0xf4   :  { %v144_v22 = vmul.f32 %v965_v11, %v87_v54 }
  0xf5   :  { %v572_v14 = vpack.c.bf16 %v561_v18, %v560_v21 }
  0xf6   :  { %v240_v23 = vadd.f32 %v991_v41, %v144_v22  ;;  %v243_v41 = vadd.f32 %v978_v26, %v147_v43  ;;  %v425_v26 = vmul.f32 %v970_v17, %v899_v37  ;;  %v142_v37 = vmul.f32 %v965_v11, %v946_v55 }
  0xf7   :  { %640 = vmatpush3.bf16.msra.mxu0 %v572_v14 }
  0xf8   :  { %v384_v27 = vpop.permute.xlu1 %383  ;;  %641 = vmatprep.subr.bf16.mxu0 %v708_v29  ;;  %v340_v25 = vadd.f32 %v324_v28, %v240_v23  ;;  %v343_v51 = vadd.f32 %v327_v35, %v243_v41 }
  0xf9   :  { %v426_v56 = vmul.f32 %v970_v17, %v384_v27 }
  0xfb   :  { %v442_v42 = vadd.f32 %v426_v56, %v342_v4 }
  0xfc   :  { %v388_v46 = vpop.permute.xlu1 %387 }
  0xfd   :  { %v427_v59 = vmul.f32 %v970_v17, %v388_v46 }
  0xff   :  { %v443_v24 = vadd.f32 %v427_v59, %v343_v51 }
 0x101   :  { %v192_v1 = vpop.permute.xlu1 %191  ;;  %v543_v36 = vadd.f32 %v527_v30, %v443_v24 }
 0x102   :  { %v241_v63 = vadd.f32 %v192_v1, %v145_v52 }
 0x103   :  { %v559_v53 = vmax.f32 %v543_v36, 0.0 }
 0x106   :  { %v280_v58 = vpop.permute.xlu1 %279 }
 0x107   :  { %v325_v3 = vmul.f32 %v967_v13, %v280_v58 }
 0x109   :  { %v341_v2 = vadd.f32 %v325_v3, %v241_v63 }
 0x10b   :  { %v441_v39 = vadd.f32 %v425_v26, %v341_v2  ;;  %v484_v32 = vpop.permute.xlu1 %483  ;;  %v460_v2 = vpop.permute.xlu0 %459 }
 0x10c   :  { %v526_v40 = vmul.f32 %v1008_v60, %v484_v32 }
 0x10d   :  { %v541_v54 = vadd.f32 %v525_v34, %v441_v39  ;;  %v140_v39 = vmul.f32 %v965_v11, %v885_v31 }
 0x10e   :  { %v542_v61 = vadd.f32 %v526_v40, %v442_v42 }
 0x10f   :  { %v557_v55 = vmax.f32 %v541_v54, 0.0  ;;  %v360_v42 = vpop.permute.xlu0 %359  ;;  %v236_v36 = vadd.f32 %v1000_v57, %v140_v39 }
 0x110   :  { %v558_v7 = vmax.f32 %v542_v61, 0.0  ;;  %v82_v9 = vpop.permute.xlu1 %81  ;;  %v141_v61 = vmul.f32 %v965_v11, %v889_v33 }
 0x111   :  { %v143_v1 = vmul.f32 %v965_v11, %v82_v9 }
 0x112   :  { %v571_v38 = vpack.c.bf16 %v559_v53, %v558_v7  ;;  %v420_v7 = vmul.f32 %v970_v17, %v360_v42 }
 0x114   :  { %642 = vmatpush3.bf16.msra.mxu0 %v571_v38 }
 0x115   :  { %v376_v5 = vpop.permute.xlu1 %375  ;;  %643 = vmatprep.subr.bf16.mxu0 %v708_v29 }
 0x116   :  { %v424_v21 = vmul.f32 %v970_v17, %v376_v5  ;;  %v321_v5 = vmul.f32 %v967_v13, %v927_v47 }
 0x118   :  { %v440_v28 = vadd.f32 %v424_v21, %v340_v25  ;;  %v138_v21 = vmul.f32 %v965_v11, %v935_v50 }
 0x11a   :  { %v177_v10 = vpop.permute.xlu1 %176 }
 0x11b   :  { %v238_v0 = vadd.f32 %v177_v10, %v142_v37  ;;  %v520_v37 = vmul.f32 %v1008_v60, %v460_v2 }
 0x11d   :  { %v338_v6 = vadd.f32 %v322_v49, %v238_v0 }
 0x11e   :  { %v182_v20 = vpop.permute.xlu1 %181 }
 0x11f   :  { %v239_v41 = vadd.f32 %v182_v20, %v143_v1 }
 0x123   :  { %v272_v44 = vpop.permute.xlu1 %271 }
 0x124   :  { %v323_v35 = vmul.f32 %v967_v13, %v272_v44 }
 0x126   :  { %v339_v48 = vadd.f32 %v323_v35, %v239_v41 }
 0x128   :  { %v476_v18 = vpop.permute.xlu1 %475 }
 0x129   :  { %v524_v22 = vmul.f32 %v1008_v60, %v476_v18 }
 0x12b   :  { %v540_v14 = vadd.f32 %v524_v22, %v440_v28  ;;  %v356_v28 = vpop.permute.xlu0 %355 }
 0x12d   :  { %v556_v23 = vmax.f32 %v540_v14, 0.0  ;;  %v368_v16 = vpop.permute.xlu1 %367 }
 0x12e   :  { %v422_v52 = vmul.f32 %v970_v17, %v368_v16 }
 0x12f   :  { %v570_v27 = vpack.c.bf16 %v557_v55, %v556_v23 }
 0x130   :  { %v438_v15 = vadd.f32 %v422_v52, %v338_v6 }
 0x131   :  { %v372_v45 = vpop.permute.xlu1 %371  ;;  %644 = vmatpush3.bf16.msra.mxu0 %v570_v27  ;;  %v419_v27 = vmul.f32 %v970_v17, %v356_v28 }
 0x132   :  { %645 = vmatprep.subr.bf16.mxu0 %v708_v29  ;;  %v423_v59 = vmul.f32 %v970_v17, %v372_v45 }
 0x134   :  { %v439_v58 = vadd.f32 %v423_v59, %v339_v48 }
 0x136   :  { %v172_v46 = vpop.permute.xlu1 %171 }
 0x137   :  { %v237_v9 = vadd.f32 %v172_v46, %v141_v61 }
 0x139   :  { %v337_v49 = vadd.f32 %v321_v5, %v237_v9 }
 0x13b   :  { %v260_v43 = vpop.permute.xlu1 %259 }
 0x13c   :  { %v320_v32 = vmul.f32 %v967_v13, %v260_v43 }
 0x13e   :  { %v336_v53 = vadd.f32 %v320_v32, %v236_v36 }
 0x140   :  { %v468_v25 = vpop.permute.xlu1 %467  ;;  %v436_v31 = vadd.f32 %v420_v7, %v336_v53 }
 0x141   :  { %v522_v62 = vmul.f32 %v1008_v60, %v468_v25 }
 0x142   :  { %v536_v57 = vadd.f32 %v520_v37, %v436_v31 }
 0x143   :  { %v538_v63 = vadd.f32 %v522_v62, %v438_v15 }
 0x144   :  { %v472_v51 = vpop.permute.xlu1 %471  ;;  %v552_v8 = vmax.f32 %v536_v57, 0.0 }
 0x145   :  { %v523_v3 = vmul.f32 %v1008_v60, %v472_v51  ;;  %v554_v56 = vmax.f32 %v538_v63, 0.0 }
 0x147   :  { %v539_v12 = vadd.f32 %v523_v3, %v439_v58 }
 0x149   :  { %v555_v24 = vmax.f32 %v539_v12, 0.0  ;;  %v364_v30 = vpop.permute.xlu1 %363 }
 0x14a   :  { %v421_v10 = vmul.f32 %v970_v17, %v364_v30 }
 0x14b   :  { %v569_v26 = vpack.c.bf16 %v555_v24, %v554_v56 }
 0x14c   :  { %v437_v6 = vadd.f32 %v421_v10, %v337_v49 }
 0x14d   :  { %646 = vmatpush3.bf16.msra.mxu0 %v569_v26 }
 0x14e   :  { %v157_v4 = vpop.permute.xlu1 %156  ;;  %647 = vmatprep.subr.bf16.mxu0 %v708_v29 }
 0x14f   :  { %v234_v22 = vadd.f32 %v157_v4, %v138_v21 }
 0x153   :  { %v252_v40 = vpop.permute.xlu1 %251 }
 0x154   :  { %v318_v47 = vmul.f32 %v967_v13, %v252_v40 }
 0x156   :  { %v334_v23 = vadd.f32 %v318_v47, %v234_v22 }
 0x157   :  { %v256_v38 = vpop.permute.xlu1 %255 }
 0x158   :  { %v319_v18 = vmul.f32 %v967_v13, %v256_v38 }
 0x15a   :  { %v335_v16 = vadd.f32 %v319_v18, %v1019_v19 }
 0x15c   :  { %v464_v0 = vpop.permute.xlu1 %463  ;;  %v435_v46 = vadd.f32 %v419_v27, %v335_v16 }
 0x15d   :  { %v521_v20 = vmul.f32 %v1008_v60, %v464_v0 }
 0x15f   :  { %v537_v33 = vadd.f32 %v521_v20, %v437_v6 }
 0x161   :  { %v553_v44 = vmax.f32 %v537_v33, 0.0  ;;  %v352_v34 = vpop.permute.xlu1 %351 }
 0x162   :  { %v418_v14 = vmul.f32 %v970_v17, %v352_v34 }
 0x163   :  { %v568_v54 = vpack.c.bf16 %v553_v44, %v552_v8 }
 0x164   :  { %v434_v11 = vadd.f32 %v418_v14, %v334_v23 }
 0x165   :  { %648 = vmatpush3.bf16.msra.mxu0 %v568_v54 }
 0x166   :  { %v452_v55 = vpop.permute.xlu1 %451  ;;  %649 = vmatprep.subr.bf16.mxu0 %v708_v29  ;;  %v566_v29 = vld [vmem:[%s1129_s3] sm:$0xf] }
 0x167   :  { %v518_v50 = vmul.f32 %v1008_v60, %v452_v55 }
 0x169   :  { %v534_v13 = vadd.f32 %v518_v50, %v434_v11 }
 0x16a   :  { %v456_v45 = vpop.permute.xlu1 %455 }
 0x16b   :  { %v519_v43 = vmul.f32 %v1008_v60, %v456_v45  ;;  %v550_v35 = vmax.f32 %v534_v13, 0.0  ;;  %v579_v19 = vpop.permute.xlu0 %578 }
 0x16d   :  { %v535_v1 = vadd.f32 %v519_v43, %v435_v46 }
 0x16f   :  { %v551_v52 = vmax.f32 %v535_v1, 0.0 }
 0x171   :  { %v567_v25 = vpack.c.bf16 %v551_v52, %v550_v35 }
 0x173   :  { %650 = vmatpush3.bf16.msra.mxu0 %v567_v25 }
 0x176   :  { %652 = vmatmul.mubr.bf16.vlgmr.msra.gmra.mxu0 %v566_v29 }
 0x236   :  { %v615_v17 = vpop.f32.mrf.mxu0 }
 0x237   :  { %v616_v41 = vadd.f32 %v615_v17, %v579_v19 }
 0x238   :  { %v653_v59 = vpop.f32.mrf.mxu0 }
 0x239   :  { %621 = vst [vmem:[%s1130_s5] sm:$0xff] %v616_v41 }
 0x23a   :  { %v618_v62 = vpop.f32.mrf.mxu0 }
 0x23c   :  { %v654_v60 = vpop.f32.mrf.mxu0 }

</bundles_post_ra>
